<compile_context>
chip_gen: v5e
topology: v5e:2x2
jax: 0.10.0
libtpu: 0.0.40
codegen_flags: <defaults>
</compile_context>

<pallas_src>
import functools

import jax
import jax.numpy as jnp
from jax.experimental import pallas as pl
from jax.experimental.pallas import tpu as pltpu

LANE = 128


def _round_up(x, m):
    return (x + m - 1) // m * m


def _full_spec(shape):
    # Full-extent block (exempt from the (8,128) divisibility rule).
    return pl.BlockSpec(shape, lambda: (0,) * len(shape))


def _vmem_capacity_bytes():
    try:
        cap = int(pltpu.get_tpu_info().vmem_capacity_bytes)
        if cap > 0:
            return cap
    except Exception:
        pass
    return 64 * 1024 * 1024      # conservative (v7x-sized) fallback


def _pick_panel(n_pad):
    for t in (512, 256, 128):
        if n_pad % t == 0:
            return t
    return n_pad                 # unreachable: n_pad is a multiple of 128


# ---------------------------------------------------------------------------
# Fused path: the whole 4-layer forward in a single kernel. The adjacency is
# streamed HBM->VMEM once as row panels (overlapped with layer-1 compute) and
# then stays resident for layers 2-4; intermediate activations never touch HBM.
# Note: a grid-less kernel runs on one TensorCore; the tiled fallback's row
# axis is "parallel" and shards across both cores on v7x.
# ---------------------------------------------------------------------------
def _gcn2_fused_kernel(x_ref, adj_hbm, w1_ref, b1_ref, w2_ref, b2_ref,
                       w3_ref, b3_ref, w4_ref, b4_ref, o_ref,
                       adj_vmem, ha_ref, hb_ref, sems, *, n_panels, panel):
    # 1) Enqueue the whole adjacency HBM -> VMEM as row-panel DMAs (they are
    #    processed in order; the compute below overlaps with the stream).
    copies = []
    for p in range(n_panels):
        rows = pl.ds(p * panel, panel)
        cp = pltpu.make_async_copy(adj_hbm.at[rows, :], adj_vmem.at[rows, :],
                                   sems.at[p])
        cp.start()
        copies.append(cp)

    w_refs = (w1_ref, w2_ref, w3_ref, w4_ref)
    b_refs = (b1_ref, b2_ref, b3_ref, b4_ref)

    # 2) Layer 1: s1 = x @ W1 runs while the first panels stream in; then the
    #    adjacency contraction proceeds one row panel at a time as its DMA
    #    completes.  Activations are kept in bf16 between layers.
    s = jnp.dot(x_ref[...], w1_ref[...],
                preferred_element_type=jnp.float32).astype(jnp.bfloat16)
    f1 = w1_ref.shape[1]
    for p in range(n_panels):
        copies[p].wait()
        rows = pl.ds(p * panel, panel)
        acc = jnp.dot(adj_vmem[rows, :], s, preferred_element_type=jnp.float32)
        ha_ref[rows, :f1] = jnp.maximum(acc + b1_ref[...], 0.0
                                        ).astype(jnp.bfloat16)

    # 3) Layers 2..4: adjacency fully resident in VMEM; ping-pong h buffers.
    #    The adjacency is only ever read in (panel, n_pad) row slices so no
    #    full-size value copy is materialized.
    src, dst = ha_ref, hb_ref
    f_in = f1
    for li in (1, 2, 3):
        w_ref, b_ref = w_refs[li], b_refs[li]
        f_out = w_ref.shape[1]
        s = jnp.dot(src[:, :f_in], w_ref[...],
                    preferred_element_type=jnp.float32).astype(jnp.bfloat16)
        last = (li == 3)
        for p in range(n_panels):
            rows = pl.ds(p * panel, panel)
            out = jnp.dot(adj_vmem[rows, :], s,
                          preferred_element_type=jnp.float32) + b_ref[...]
            if last:
                o_ref[rows, :] = out.astype(o_ref.dtype)
            else:
                out = jnp.maximum(out, 0.0)
                dst[rows, :f_out] = out.astype(jnp.bfloat16)
        src, dst = dst, src
        f_in = f_out


def _gcn2_fused(layers, x, adj, n_pad, vmem_limit):
    n, nfeat = x.shape
    f0p = _round_up(nfeat, LANE)
    x_p = jnp.zeros((n_pad, f0p), jnp.bfloat16).at[:n, :nfeat].set(
        x.astype(jnp.bfloat16))
    adj_p = jnp.zeros((n_pad, n_pad), jnp.bfloat16).at[:n, :n].set(
        adj.astype(jnp.bfloat16))

    # Zero-pad every weight / bias to lane-dense multiples of 128 (exact:
    # padded rows/cols are zeros, padded output columns are sliced off).
    wbs = []
    f_prev_p = f0p
    flops = 0
    for (w, b, _) in layers:
        f_in, f_out = w.shape
        f_out_p = _round_up(f_out, LANE)
        wp = jnp.zeros((f_prev_p, f_out_p), jnp.bfloat16).at[:f_in, :f_out].set(
            w.astype(jnp.bfloat16))
        bp = jnp.zeros((1, f_out_p), jnp.float32).at[0, :f_out].set(
            b.astype(jnp.float32))
        wbs += [wp, bp]
        flops += 2 * n_pad * f_prev_p * f_out_p + 2 * n_pad * n_pad * f_out_p
        f_prev_p = f_out_p
    nout_p = f_prev_p
    fh_max = max(wbs[2 * i].shape[1] for i in range(len(layers) - 1))

    panel = _pick_panel(n_pad)
    n_panels = n_pad // panel

    operands = [x_p, adj_p] + wbs
    in_specs = ([_full_spec(x_p.shape), pl.BlockSpec(memory_space=pl.ANY)]
                + [_full_spec(a.shape) for a in wbs])
    bytes_accessed = sum(int(a.size) * a.dtype.itemsize for a in operands)
    bytes_accessed += n_pad * nout_p * 4

    kernel = functools.partial(_gcn2_fused_kernel,
                               n_panels=n_panels, panel=panel)
    return pl.pallas_call(
        kernel,
        out_shape=jax.ShapeDtypeStruct((n_pad, nout_p), jnp.float32),
        in_specs=in_specs,
        out_specs=_full_spec((n_pad, nout_p)),
        scratch_shapes=[
            pltpu.VMEM((n_pad, n_pad), jnp.bfloat16),    # resident adjacency
            pltpu.VMEM((n_pad, fh_max), jnp.bfloat16),   # h ping
            pltpu.VMEM((n_pad, fh_max), jnp.bfloat16),   # h pong
            pltpu.SemaphoreType.DMA((n_panels,)),
        ],
        compiler_params=pltpu.CompilerParams(
            vmem_limit_bytes=int(vmem_limit)),
        cost_estimate=pl.CostEstimate(flops=int(flops), transcendentals=0,
                                      bytes_accessed=int(bytes_accessed)),
    )(*operands)


# ---------------------------------------------------------------------------
# Tiled fallback (adjacency too large for VMEM): one pallas_call per layer.
#   acc_i += adj[i,k] @ h[k]   (k grid axis, f32 VMEM accumulator)
#   out_i  = relu?( (acc_i) @ W + b )   in the k == last epilogue
# ---------------------------------------------------------------------------
def _gcn_layer_kernel(adj_ref, h_ref, w_ref, b_ref, o_ref, acc_ref, *,
                      apply_relu):
    k = pl.program_id(1)

    @pl.when(k == 0)
    def _():
        acc_ref[...] = jnp.zeros_like(acc_ref)

    acc_ref[...] += jnp.dot(adj_ref[...], h_ref[...],
                            preferred_element_type=jnp.float32)

    @pl.when(k == pl.num_programs(1) - 1)
    def _():
        t = acc_ref[...].astype(jnp.bfloat16)
        out = jnp.dot(t, w_ref[...],
                      preferred_element_type=jnp.float32) + b_ref[...]
        if apply_relu:
            out = jnp.maximum(out, 0.0)
        o_ref[...] = out.astype(o_ref.dtype)


def _gcn_layer_tiled(adj_p, h, w_p, b_p, *, apply_relu, out_dtype, tile):
    n_pad = adj_p.shape[0]
    f_in_p = h.shape[1]
    f_out_p = w_p.shape[1]
    kernel = functools.partial(_gcn_layer_kernel, apply_relu=apply_relu)
    return pl.pallas_call(
        kernel,
        out_shape=jax.ShapeDtypeStruct((n_pad, f_out_p), out_dtype),
        grid=(n_pad // tile, n_pad // tile),
        in_specs=[
            pl.BlockSpec((tile, tile), lambda i, k: (i, k)),
            pl.BlockSpec((tile, f_in_p), lambda i, k: (k, 0)),
            pl.BlockSpec((f_in_p, f_out_p), lambda i, k: (0, 0)),
            pl.BlockSpec((1, f_out_p), lambda i, k: (0, 0)),
        ],
        out_specs=pl.BlockSpec((tile, f_out_p), lambda i, k: (i, 0)),
        scratch_shapes=[pltpu.VMEM((tile, f_in_p), jnp.float32)],
        compiler_params=pltpu.CompilerParams(
            dimension_semantics=("parallel", "arbitrary")),
    )(adj_p, h, w_p, b_p)


def _gcn2_tiled(layers, x, adj, tile):
    n, nfeat = x.shape
    tile = max(LANE, _round_up(tile, LANE))
    n_pad = _round_up(max(n, tile), tile)
    f0p = _round_up(nfeat, LANE)

    h = jnp.zeros((n_pad, f0p), jnp.bfloat16).at[:n, :nfeat].set(
        x.astype(jnp.bfloat16))
    adj_p = jnp.zeros((n_pad, n_pad), jnp.bfloat16).at[:n, :n].set(
        adj.astype(jnp.bfloat16))

    n_layers = len(layers)
    for li, (w, b, apply_relu) in enumerate(layers):
        f_in, f_out = w.shape
        f_in_p = h.shape[1]
        f_out_p = _round_up(f_out, LANE)
        w_p = jnp.zeros((f_in_p, f_out_p), jnp.bfloat16).at[:f_in, :f_out].set(
            w.astype(jnp.bfloat16))
        b_p = jnp.zeros((1, f_out_p), jnp.float32).at[0, :f_out].set(
            b.astype(jnp.float32))
        out_dtype = jnp.float32 if li == n_layers - 1 else jnp.bfloat16
        h = _gcn_layer_tiled(adj_p, h, w_p, b_p, apply_relu=apply_relu,
                             out_dtype=out_dtype, tile=tile)
    return h


# ---------------------------------------------------------------------------
# GCN2 forward (inference mode: F.dropout with training=False is identity)
# ---------------------------------------------------------------------------
def gcn2_forward(params, x, adj, *, force_tiled=False, tile=512):
    n, nfeat = x.shape
    assert adj.shape == (n, n)
    layers = [
        (params["w1"], params["b1"], True),    # gc1  + relu
        (params["w15"], params["b15"], True),  # gc15 + relu
        (params["w16"], params["b16"], True),  # gc16 + relu
        (params["w2"], params["b2"], False),   # gc2  (no relu)
    ]
    nout = layers[-1][0].shape[1]

    # Generation-aware VMEM budget: fused-path need and its vmem limit are
    # derived from the SAME budget, so raising one never breaks the other.
    budget = int(_vmem_capacity_bytes() * 0.8)

    n_pad = _round_up(max(n, 1), LANE)
    f0p = _round_up(nfeat, LANE)
    fh_max = max(_round_up(w.shape[1], LANE) for (w, _, _) in layers[:-1])
    nout_p = _round_up(nout, LANE)
    need = (2 * n_pad * n_pad          # bf16 adjacency resident in VMEM
            + 2 * n_pad * f0p          # bf16 padded x
            + 4 * n_pad * fh_max       # two bf16 h ping-pong buffers
            + 4 * n_pad * nout_p       # f32 padded output
            + 12 * n_pad * fh_max      # s / accumulator temporaries (generous)
            + (2 << 20))               # weights, biases, slack

    use_fused = (not force_tiled) and (need <= budget)
    if use_fused:
        out = _gcn2_fused(layers, x, adj, n_pad, vmem_limit=budget)
    else:
        out = _gcn2_tiled(layers, x, adj, tile)
    return out[:n, :nout]


def init_gcn2_params(key, nfeat, nhid, nout):
    """Matches GraphConvolution.reset_parameters: U(-1/sqrt(fo), +1/sqrt(fo))."""
    dims = [
        ("w1", "b1", nfeat, nhid),
        ("w15", "b15", nhid, nhid),
        ("w16", "b16", nhid, nhid * 4),
        ("w2", "b2", nhid * 4, nout),
    ]
    params = {}
    for wname, bname, fi, fo in dims:
        key, kw, kb = jax.random.split(key, 3)
        stdv = 1.0 / (fo ** 0.5)
        params[wname] = jax.random.uniform(
            kw, (fi, fo), jnp.float32, minval=-stdv, maxval=stdv)
        params[bname] = jax.random.uniform(
            kb, (fo,), jnp.float32, minval=-stdv, maxval=stdv)
    return params


# Pure-JAX f32 reference (same math, no Pallas).
def gcn2_forward_ref(params, x, adj):
    h = jax.nn.relu(adj @ (x @ params["w1"]) + params["b1"])
    h = jax.nn.relu(adj @ (h @ params["w15"]) + params["b15"])
    h = jax.nn.relu(adj @ (h @ params["w16"]) + params["b16"])
    return adj @ (h @ params["w2"]) + params["b2"]


def _check(name, out, ref, rel=0.04, atol=2e-3):
    err = float(jnp.max(jnp.abs(out - ref)))
    scale = float(jnp.max(jnp.abs(ref)))
    assert err <= atol + rel * scale, (
        f"{name}: max abs err {err:.3e} vs scale {scale:.3e}")


def _make_graph(key, n, nfeat, density):
    kx, kadj = jax.random.split(key)
    x = jax.random.normal(kx, (n, nfeat), jnp.float32)
    a = (jax.random.uniform(kadj, (n, n)) < density).astype(jnp.float32)
    a = jnp.maximum(a, a.T) + jnp.eye(n, dtype=jnp.float32)
    adj = a / jnp.sum(a, axis=1, keepdims=True)   # row-normalized w/ self-loops
    return x, adj


if __name__ == "__main__":
    NFEAT, NHID, NOUT = 32, 16, 8
    key = jax.random.PRNGKey(0)

    # ---- small graph: fused single-kernel path (single adjacency panel) ----
    key, kg, kp = jax.random.split(key, 3)
    N = 64
    x, adj = _make_graph(kg, N, NFEAT, density=0.10)
    params = init_gcn2_params(kp, NFEAT, NHID, NOUT)
    out = jax.block_until_ready(gcn2_forward(params, x, adj))
    assert out.shape == (N, NOUT)
    _check("fused", out, gcn2_forward_ref(params, x, adj))

    # ---- fused path with multiple adjacency row panels (DMA-overlap loop) ---
    key, kg1, kp1 = jax.random.split(key, 3)
    N1 = 320
    x1, adj1 = _make_graph(kg1, N1, NFEAT, density=0.05)
    params1 = init_gcn2_params(kp1, NFEAT, NHID, NOUT)
    out1 = jax.block_until_ready(gcn2_forward(params1, x1, adj1))
    assert out1.shape == (N1, NOUT)
    _check("fused_multi_panel", out1, gcn2_forward_ref(params1, x1, adj1))

    # ---- tiled fallback (exercises the k-accumulation grid) ----------------
    key, kg2, kp2 = jax.random.split(key, 3)
    N2 = 300
    x2, adj2 = _make_graph(kg2, N2, NFEAT, density=0.05)
    params2 = init_gcn2_params(kp2, NFEAT, NHID, NOUT)
    out2 = jax.block_until_ready(
        gcn2_forward(params2, x2, adj2, force_tiled=True, tile=256))
    assert out2.shape == (N2, NOUT)
    _check("tiled", out2, gcn2_forward_ref(params2, x2, adj2))

    print("KERNEL_OK")
</pallas_src>

<mosaic_0001>
module attributes {stable_mosaic.version = 11 : i64} {
  func.func @_gcn2_fused_kernel(%arg0: memref<128x128xbf16, #tpu.memory_space<vmem>>, %arg1: memref<128x128xbf16, #tpu.memory_space<any>>, %arg2: memref<128x128xbf16, #tpu.memory_space<vmem>>, %arg3: memref<1x128xf32, #tpu.memory_space<vmem>>, %arg4: memref<128x128xbf16, #tpu.memory_space<vmem>>, %arg5: memref<1x128xf32, #tpu.memory_space<vmem>>, %arg6: memref<128x128xbf16, #tpu.memory_space<vmem>>, %arg7: memref<1x128xf32, #tpu.memory_space<vmem>>, %arg8: memref<128x128xbf16, #tpu.memory_space<vmem>>, %arg9: memref<1x128xf32, #tpu.memory_space<vmem>>, %arg10: memref<128x128xf32, #tpu.memory_space<vmem>>, %arg11: memref<128x128xbf16, #tpu.memory_space<vmem>>, %arg12: memref<128x128xbf16, #tpu.memory_space<vmem>>, %arg13: memref<128x128xbf16, #tpu.memory_space<vmem>>, %arg14: memref<1x!tpu.dma_semaphore, #tpu.memory_space<semaphore_mem>>) attributes {dimension_semantics = [], scalar_prefetch = 0 : i64, scratch_operands = 4 : i64, tpu.core_type = #tpu.core_type<tc>} {
    %c0_i32 = arith.constant 0 : i32
    %c0_i32_0 = arith.constant 0 : i32
    %c0_i32_1 = arith.constant 0 : i32
    %0 = tpu.memref_slice %arg1[%c0_i32_0, %c0_i32_1] : memref<128x128xbf16, #tpu.memory_space<any>> -> memref<128x128xbf16, #tpu.memory_space<any>>
    %c0_i32_2 = arith.constant 0 : i32
    %c0_i32_3 = arith.constant 0 : i32
    %1 = tpu.memref_slice %arg11[%c0_i32_2, %c0_i32_3] : memref<128x128xbf16, #tpu.memory_space<vmem>> -> memref<128x128xbf16, #tpu.memory_space<vmem>>
    %2 = tpu.memref_slice %arg14[%c0_i32] : memref<1x!tpu.dma_semaphore, #tpu.memory_space<semaphore_mem>> -> memref<1x!tpu.dma_semaphore, #tpu.memory_space<semaphore_mem>>
    %3 = tpu.memref_squeeze %2 : memref<1x!tpu.dma_semaphore, #tpu.memory_space<semaphore_mem>> -> memref<!tpu.dma_semaphore, #tpu.memory_space<semaphore_mem>>
    tpu.enqueue_dma source(%0 : memref<128x128xbf16, #tpu.memory_space<any>>) target(%1 : memref<128x128xbf16, #tpu.memory_space<vmem>>) target_semaphore(%3 : memref<!tpu.dma_semaphore, #tpu.memory_space<semaphore_mem>>)
    %c0 = arith.constant 0 : index
    %c0_4 = arith.constant 0 : index
    %4 = vector.load %arg0[%c0, %c0_4] : memref<128x128xbf16, #tpu.memory_space<vmem>>, vector<128x128xbf16>
    %c0_5 = arith.constant 0 : index
    %c0_6 = arith.constant 0 : index
    %5 = vector.load %arg2[%c0_5, %c0_6] : memref<128x128xbf16, #tpu.memory_space<vmem>>, vector<128x128xbf16>
    %cst = arith.constant dense<0.000000e+00> : vector<128x128xf32>
    %6 = tpu.matmul %4, %5, %cst {dimension_numbers = #tpu.dot_dimension_numbers<[1], [0], [0], [1], [0, 0, 1, 1], [], []>} : vector<128x128xbf16>, vector<128x128xbf16>, vector<128x128xf32> -> vector<128x128xf32>
    %7 = arith.truncf %6 : vector<128x128xf32> to vector<128x128xbf16>
    %c0_i32_7 = arith.constant 0 : i32
    %c0_i32_8 = arith.constant 0 : i32
    %c0_i32_9 = arith.constant 0 : i32
    %8 = tpu.memref_slice %arg1[%c0_i32_8, %c0_i32_9] : memref<128x128xbf16, #tpu.memory_space<any>> -> memref<128x128xbf16, #tpu.memory_space<any>>
    %c0_i32_10 = arith.constant 0 : i32
    %c0_i32_11 = arith.constant 0 : i32
    %9 = tpu.memref_slice %arg11[%c0_i32_10, %c0_i32_11] : memref<128x128xbf16, #tpu.memory_space<vmem>> -> memref<128x128xbf16, #tpu.memory_space<vmem>>
    %10 = tpu.memref_slice %arg14[%c0_i32_7] : memref<1x!tpu.dma_semaphore, #tpu.memory_space<semaphore_mem>> -> memref<1x!tpu.dma_semaphore, #tpu.memory_space<semaphore_mem>>
    %11 = tpu.memref_squeeze %10 : memref<1x!tpu.dma_semaphore, #tpu.memory_space<semaphore_mem>> -> memref<!tpu.dma_semaphore, #tpu.memory_space<semaphore_mem>>
    tpu.wait_dma2 semaphore(%11 : memref<!tpu.dma_semaphore, #tpu.memory_space<semaphore_mem>>) src(%8 : memref<128x128xbf16, #tpu.memory_space<any>>) dst(%9 : memref<128x128xbf16, #tpu.memory_space<vmem>>)
    %c0_12 = arith.constant 0 : index
    %c0_13 = arith.constant 0 : index
    %12 = vector.load %arg11[%c0_12, %c0_13] : memref<128x128xbf16, #tpu.memory_space<vmem>>, vector<128x128xbf16>
    %cst_14 = arith.constant dense<0.000000e+00> : vector<128x128xf32>
    %13 = tpu.matmul %12, %7, %cst_14 {dimension_numbers = #tpu.dot_dimension_numbers<[1], [0], [0], [1], [0, 0, 1, 1], [], []>} : vector<128x128xbf16>, vector<128x128xbf16>, vector<128x128xf32> -> vector<128x128xf32>
    %c0_15 = arith.constant 0 : index
    %c0_16 = arith.constant 0 : index
    %14 = vector.load %arg3[%c0_15, %c0_16] : memref<1x128xf32, #tpu.memory_space<vmem>>, vector<1x128xf32>
    %15 = vector.broadcast %14 : vector<1x128xf32> to vector<128x128xf32>
    %16 = arith.addf %13, %15 : vector<128x128xf32>
    %cst_17 = arith.constant 0.000000e+00 : f32
    %17 = vector.broadcast %cst_17 : f32 to vector<128x128xf32>
    %18 = arith.maximumf %16, %17 : vector<128x128xf32>
    %19 = arith.truncf %18 : vector<128x128xf32> to vector<128x128xbf16>
    %c0_18 = arith.constant 0 : index
    %c0_19 = arith.constant 0 : index
    %20 = vector.load %arg12[%c0_18, %c0_19] : memref<128x128xbf16, #tpu.memory_space<vmem>>, vector<128x128xbf16>
    tpu.vector_store %arg12[%c0_18, %c0_19], %19 {strides = array<i32>} : memref<128x128xbf16, #tpu.memory_space<vmem>>, vector<128x128xbf16>,
    %c0_20 = arith.constant 0 : index
    %c0_21 = arith.constant 0 : index
    %21 = vector.load %arg12[%c0_20, %c0_21] : memref<128x128xbf16, #tpu.memory_space<vmem>>, vector<128x128xbf16>
    %c0_22 = arith.constant 0 : index
    %c0_23 = arith.constant 0 : index
    %22 = vector.load %arg4[%c0_22, %c0_23] : memref<128x128xbf16, #tpu.memory_space<vmem>>, vector<128x128xbf16>
    %cst_24 = arith.constant dense<0.000000e+00> : vector<128x128xf32>
    %23 = tpu.matmul %21, %22, %cst_24 {dimension_numbers = #tpu.dot_dimension_numbers<[1], [0], [0], [1], [0, 0, 1, 1], [], []>} : vector<128x128xbf16>, vector<128x128xbf16>, vector<128x128xf32> -> vector<128x128xf32>
    %24 = arith.truncf %23 : vector<128x128xf32> to vector<128x128xbf16>
    %c0_25 = arith.constant 0 : index
    %c0_26 = arith.constant 0 : index
    %25 = vector.load %arg11[%c0_25, %c0_26] : memref<128x128xbf16, #tpu.memory_space<vmem>>, vector<128x128xbf16>
    %cst_27 = arith.constant dense<0.000000e+00> : vector<128x128xf32>
    %26 = tpu.matmul %25, %24, %cst_27 {dimension_numbers = #tpu.dot_dimension_numbers<[1], [0], [0], [1], [0, 0, 1, 1], [], []>} : vector<128x128xbf16>, vector<128x128xbf16>, vector<128x128xf32> -> vector<128x128xf32>
    %c0_28 = arith.constant 0 : index
    %c0_29 = arith.constant 0 : index
    %27 = vector.load %arg5[%c0_28, %c0_29] : memref<1x128xf32, #tpu.memory_space<vmem>>, vector<1x128xf32>
    %28 = vector.broadcast %27 : vector<1x128xf32> to vector<128x128xf32>
    %29 = arith.addf %26, %28 : vector<128x128xf32>
    %cst_30 = arith.constant 0.000000e+00 : f32
    %30 = vector.broadcast %cst_30 : f32 to vector<128x128xf32>
    %31 = arith.maximumf %29, %30 : vector<128x128xf32>
    %32 = arith.truncf %31 : vector<128x128xf32> to vector<128x128xbf16>
    %c0_31 = arith.constant 0 : index
    %c0_32 = arith.constant 0 : index
    %33 = vector.load %arg13[%c0_31, %c0_32] : memref<128x128xbf16, #tpu.memory_space<vmem>>, vector<128x128xbf16>
    tpu.vector_store %arg13[%c0_31, %c0_32], %32 {strides = array<i32>} : memref<128x128xbf16, #tpu.memory_space<vmem>>, vector<128x128xbf16>,
    %c0_33 = arith.constant 0 : index
    %c0_34 = arith.constant 0 : index
    %34 = vector.load %arg13[%c0_33, %c0_34] : memref<128x128xbf16, #tpu.memory_space<vmem>>, vector<128x128xbf16>
    %c0_35 = arith.constant 0 : index
    %c0_36 = arith.constant 0 : index
    %35 = vector.load %arg6[%c0_35, %c0_36] : memref<128x128xbf16, #tpu.memory_space<vmem>>, vector<128x128xbf16>
    %cst_37 = arith.constant dense<0.000000e+00> : vector<128x128xf32>
    %36 = tpu.matmul %34, %35, %cst_37 {dimension_numbers = #tpu.dot_dimension_numbers<[1], [0], [0], [1], [0, 0, 1, 1], [], []>} : vector<128x128xbf16>, vector<128x128xbf16>, vector<128x128xf32> -> vector<128x128xf32>
    %37 = arith.truncf %36 : vector<128x128xf32> to vector<128x128xbf16>
    %c0_38 = arith.constant 0 : index
    %c0_39 = arith.constant 0 : index
    %38 = vector.load %arg11[%c0_38, %c0_39] : memref<128x128xbf16, #tpu.memory_space<vmem>>, vector<128x128xbf16>
    %cst_40 = arith.constant dense<0.000000e+00> : vector<128x128xf32>
    %39 = tpu.matmul %38, %37, %cst_40 {dimension_numbers = #tpu.dot_dimension_numbers<[1], [0], [0], [1], [0, 0, 1, 1], [], []>} : vector<128x128xbf16>, vector<128x128xbf16>, vector<128x128xf32> -> vector<128x128xf32>
    %c0_41 = arith.constant 0 : index
    %c0_42 = arith.constant 0 : index
    %40 = vector.load %arg7[%c0_41, %c0_42] : memref<1x128xf32, #tpu.memory_space<vmem>>, vector<1x128xf32>
    %41 = vector.broadcast %40 : vector<1x128xf32> to vector<128x128xf32>
    %42 = arith.addf %39, %41 : vector<128x128xf32>
    %cst_43 = arith.constant 0.000000e+00 : f32
    %43 = vector.broadcast %cst_43 : f32 to vector<128x128xf32>
    %44 = arith.maximumf %42, %43 : vector<128x128xf32>
    %45 = arith.truncf %44 : vector<128x128xf32> to vector<128x128xbf16>
    %c0_44 = arith.constant 0 : index
    %c0_45 = arith.constant 0 : index
    %46 = vector.load %arg12[%c0_44, %c0_45] : memref<128x128xbf16, #tpu.memory_space<vmem>>, vector<128x128xbf16>
    tpu.vector_store %arg12[%c0_44, %c0_45], %45 {strides = array<i32>} : memref<128x128xbf16, #tpu.memory_space<vmem>>, vector<128x128xbf16>,
    %c0_46 = arith.constant 0 : index
    %c0_47 = arith.constant 0 : index
    %47 = vector.load %arg12[%c0_46, %c0_47] : memref<128x128xbf16, #tpu.memory_space<vmem>>, vector<128x128xbf16>
    %c0_48 = arith.constant 0 : index
    %c0_49 = arith.constant 0 : index
    %48 = vector.load %arg8[%c0_48, %c0_49] : memref<128x128xbf16, #tpu.memory_space<vmem>>, vector<128x128xbf16>
    %cst_50 = arith.constant dense<0.000000e+00> : vector<128x128xf32>
    %49 = tpu.matmul %47, %48, %cst_50 {dimension_numbers = #tpu.dot_dimension_numbers<[1], [0], [0], [1], [0, 0, 1, 1], [], []>} : vector<128x128xbf16>, vector<128x128xbf16>, vector<128x128xf32> -> vector<128x128xf32>
    %50 = arith.truncf %49 : vector<128x128xf32> to vector<128x128xbf16>
    %c0_51 = arith.constant 0 : index
    %c0_52 = arith.constant 0 : index
    %51 = vector.load %arg11[%c0_51, %c0_52] : memref<128x128xbf16, #tpu.memory_space<vmem>>, vector<128x128xbf16>
    %cst_53 = arith.constant dense<0.000000e+00> : vector<128x128xf32>
    %52 = tpu.matmul %51, %50, %cst_53 {dimension_numbers = #tpu.dot_dimension_numbers<[1], [0], [0], [1], [0, 0, 1, 1], [], []>} : vector<128x128xbf16>, vector<128x128xbf16>, vector<128x128xf32> -> vector<128x128xf32>
    %c0_54 = arith.constant 0 : index
    %c0_55 = arith.constant 0 : index
    %53 = vector.load %arg9[%c0_54, %c0_55] : memref<1x128xf32, #tpu.memory_space<vmem>>, vector<1x128xf32>
    %54 = vector.broadcast %53 : vector<1x128xf32> to vector<128x128xf32>
    %55 = arith.addf %52, %54 : vector<128x128xf32>
    %c0_56 = arith.constant 0 : index
    %c0_57 = arith.constant 0 : index
    %56 = vector.load %arg10[%c0_56, %c0_57] : memref<128x128xf32, #tpu.memory_space<vmem>>, vector<128x128xf32>
    tpu.vector_store %arg10[%c0_56, %c0_57], %55 {strides = array<i32>} : memref<128x128xf32, #tpu.memory_space<vmem>>, vector<128x128xf32>,
    return
  }
}

</mosaic_0001>

<bundles_post_ra>
// kernel: tpu_custom_call.1
= control target key start
LH: loop header
LB: loop body
LE: loop exit
PB: predicated region body
PF: predicated region fallthrough
CT: control target
= control target key end

     0   :  { %15 = vsyncpa [#allocation7], 0  ;;  %s2492_s0 = inlined_call_operand.hbm [shape: bf16[128,128], index: 0, kind: input, shape index: {}]   ;;  %s2493_s1 = inlined_call_operand.hbm [shape: bf16[128,128], index: 1, kind: input, shape index: {}]   ;;  %s2494_s2 = inlined_call_operand.hbm [shape: bf16[128,128], index: 2, kind: input, shape index: {}]   ;;  %s2495_s3 = inlined_call_operand.vmem [shape: f32[1,128], index: 3, kind: input, shape index: {}]   ;;  %s2496_s4 = inlined_call_operand.hbm [shape: bf16[128,128], index: 4, kind: input, shape index: {}]   ;;  %s2497_s5 = inlined_call_operand.vmem [shape: f32[1,128], index: 5, kind: input, shape index: {}]   ;;  %s2498_s6 = inlined_call_operand.hbm [shape: bf16[128,128], index: 6, kind: input, shape index: {}]   ;;  %s2499_s7 = inlined_call_operand.vmem [shape: f32[1,128], index: 7, kind: input, shape index: {}]   ;;  %s2500_s8 = inlined_call_operand.hbm [shape: bf16[128,128], index: 8, kind: input, shape index: {}]   ;;  %s2501_s9 = inlined_call_operand.vmem [shape: f32[1,128], index: 9, kind: input, shape index: {}]   ;;  %s2502_s10 = inlined_call_operand.hbm [shape: f32[128,128], index: 10, kind: output, shape index: {}]  }
   0x1   :  { %16 = vsyncpa [#allocation10], 0 }
   0x2   :  { %17 = vsyncpa [#allocation13], 0 }
   0x3   :  { %18 = vsyncpa [#allocation8], 0  ;;  %s36_s15 = sshll.u32 %s2494_s2, 4  ;;  %s2339_s16 = smov [#allocation9]   ;;  %s37_s15 = int_to_ptr.hbm [resolvable:$true] %s36_s15 }
   0x4   :  { %s38_s17 = sshll.u32 %s2339_s16, 4  ;;  %s66_s20 = sshll.u32 %s2498_s6, 4  ;;  %s39_s17 = int_to_ptr.vmem [resolvable:$true] %s38_s17  ;;  %s67_s20 = int_to_ptr.hbm [resolvable:$true] %s66_s20 }
   0x5   :  { %s2340_s21 = smov 64   ;;  %s2341_s22 = smov 4  }
   0x6   :  { %44 = dma.hbm_to_vmem [thread:$0]  %s37_s15, 1024, %s39_s17, [#allocation10], %s2340_s21, %s2340_s21, %s2341_s22  }
   0x7   :  { %s2342_s23 = smov [#allocation12]   ;;  %s23_s27 = sshll.u32 %s2492_s0, 4  ;;  %s24_s27 = int_to_ptr.hbm [resolvable:$true] %s23_s27 }
   0x8   :  { %s68_s24 = sshll.u32 %s2342_s23, 4  ;;  %s51_s29 = sshll.u32 %s2496_s4, 4  ;;  %s69_s24 = int_to_ptr.vmem [resolvable:$true] %s68_s24  ;;  %s52_s29 = int_to_ptr.hbm [resolvable:$true] %s51_s29 }
   0x9   :  { %74 = dma.hbm_to_vmem [thread:$0]  %s67_s20, 1024, %s69_s24, [#allocation13], %s2340_s21, %s2340_s21, %s2341_s22  }
   0xa   :  { %s2343_s30 = smov [#allocation6]   ;;  %s2344_s6 = smov [#allocation11]  }
   0xb   :  { %s25_s11 = sshll.u32 %s2343_s30, 4  ;;  %s53_s12 = sshll.u32 %s2344_s6, 4  ;;  %s26_s11 = int_to_ptr.vmem [resolvable:$true] %s25_s11  ;;  %s54_s12 = int_to_ptr.vmem [resolvable:$true] %s53_s12 }
   0xc   :  { %31 = dma.hbm_to_vmem [thread:$0]  %s24_s27, 1024, %s26_s11, [#allocation7], %s2340_s21, %s2340_s21, %s2341_s22  }
   0xd   :  { %s81_s15 = sshll.u32 %s2500_s8, 4  ;;  %s2345_s0 = smov [#allocation14]   ;;  %s82_s15 = int_to_ptr.hbm [resolvable:$true] %s81_s15 }
   0xe   :  { %59 = dma.hbm_to_vmem [thread:$0]  %s52_s29, 1024, %s54_s12, [#allocation10], %s2340_s21, %s2340_s21, %s2341_s22  }
   0xf   :  { %s83_s16 = sshll.u32 %s2345_s0, 4  ;;  %s84_s16 = int_to_ptr.vmem [resolvable:$true] %s83_s16 }
  0x10   :  { %89 = dma.hbm_to_vmem [thread:$0]  %s82_s15, 1024, %s84_s16, [#allocation13], %s2340_s21, %s2340_s21, %s2341_s22  }
  0x11   :  { %2329 = dma.done.wait [#allocation7], 1024  }
  0x12   :  { %2330 = vsyncadd [#allocation7], 4294966272 }
  0x13   :  { %2331 = dma.done.wait [#allocation10], 2048  }
  0x14   :  { %2332 = vsyncadd [#allocation10], 4294965248 }
  0x15   :  { %2333 = dma.done.wait [#allocation13], 2048  }
  0x16   :  { %2334 = vsyncadd [#allocation13], 4294965248  ;;  %v1924_v0 = vld [vmem:[#allocation9 + $0x38] sm:$0xff]  ;;  %v1923_v1 = vld [vmem:[#allocation9 + $0x30] sm:$0xff]  ;;  %s119_s17 = sshll.u32 %s2493_s1, 4  ;;  %s2346_s18 = smov [#allocation2]   ;;  %s120_s17 = int_to_ptr.hbm [resolvable:$true] %s119_s17 }
  0x17   :  { %253 = vmatpush.bf16.msra.mxu0 %v1924_v0  ;;  %v1922_v2 = vld [vmem:[#allocation9 + $0x28] sm:$0xff]  ;;  %v1921_v3 = vld [vmem:[#allocation9 + $0x20] sm:$0xff]  ;;  %v1920_v4 = vld [vmem:[#allocation9 + $0x18] sm:$0xff]  ;;  %s121_s19 = sshll.u32 %s2346_s18, 4  ;;  %s122_s19 = int_to_ptr.vmem [resolvable:$true] %s121_s19 }
  0x18   :  { %v1919_v5 = vld [vmem:[#allocation9 + $0x10] sm:$0xff]  ;;  %v1918_v6 = vld [vmem:[#allocation9 + $0x8] sm:$0xff]  ;;  %v1917_v7 = vld [vmem:[#allocation9] sm:$0xff]  ;;  %124 = dma.hbm_to_vmem [thread:$0]  %s120_s17, 1024, %s122_s19, [#allocation5] }
  0x19   :  { %v1909_v8 = vld [vmem:[#allocation6] sm:$0xff]  ;;  %v1910_v9 = vld [vmem:[#allocation6 + $0x8] sm:$0xff]  ;;  %v1911_v10 = vld [vmem:[#allocation6 + $0x10] sm:$0xff] }
  0x1a   :  { %v1912_v11 = vld [vmem:[#allocation6 + $0x18] sm:$0xff]  ;;  %v1913_v12 = vld [vmem:[#allocation6 + $0x20] sm:$0xff]  ;;  %v1914_v13 = vld [vmem:[#allocation6 + $0x28] sm:$0xff] }
  0x1b   :  { %254 = vmatpush.bf16.msra.mxu0 %v1923_v1  ;;  %v1915_v14 = vld [vmem:[#allocation6 + $0x30] sm:$0xff]  ;;  %v1916_v15 = vld [vmem:[#allocation6 + $0x38] sm:$0xff] }
  0x1f   :  { %255 = vmatpush.bf16.msra.mxu0 %v1922_v2 }
  0x23   :  { %256 = vmatpush.bf16.msra.mxu0 %v1921_v3 }
  0x27   :  { %257 = vmatpush.bf16.msra.mxu0 %v1920_v4 }
  0x2b   :  { %258 = vmatpush.bf16.msra.mxu0 %v1919_v5 }
  0x2f   :  { %259 = vmatpush.bf16.msra.mxu0 %v1918_v6 }
  0x33   :  { %260 = vmatpush.bf16.msra.mxu0 %v1917_v7 }
  0x36   :  { %261 = vmatmul.bf16.vlgmr.msra.gmra.mxu0 %v1909_v8 }
  0x46   :  { %266 = vmatmul.bf16.gmra.mxu0 %v1910_v9 }
  0x56   :  { %271 = vmatmul.bf16.gmra.mxu0 %v1911_v10 }
  0x66   :  { %276 = vmatmul.bf16.gmra.mxu0 %v1912_v11 }
  0x76   :  { %281 = vmatmul.bf16.gmra.mxu0 %v1913_v12 }
  0x86   :  { %286 = vmatmul.bf16.gmra.mxu0 %v1914_v13 }
  0x96   :  { %291 = vmatmul.bf16.gmra.mxu0 %v1915_v14 }
  0xa6   :  { %296 = vmatmul.bf16.gmra.mxu0 %v1916_v15 }
  0xb3   :  { %v262_v16 = vpop.f32.mrf.mxu0 }
  0xbb   :  { %v264_v17 = vpop.f32.mrf.mxu0 }
  0xbc   :  { %v302_v18 = vpack.c.bf16 %v264_v17, %v262_v16 }
  0xc3   :  { %v267_v19 = vpop.f32.mrf.mxu0 }
  0xcb   :  { %v269_v20 = vpop.f32.mrf.mxu0 }
  0xcc   :  { %v303_v21 = vpack.c.bf16 %v269_v20, %v267_v19 }
  0xd3   :  { %v272_v22 = vpop.f32.mrf.mxu0 }
  0xdb   :  { %v274_v23 = vpop.f32.mrf.mxu0 }
  0xdc   :  { %v304_v24 = vpack.c.bf16 %v274_v23, %v272_v22 }
  0xe3   :  { %v277_v25 = vpop.f32.mrf.mxu0 }
  0xeb   :  { %v279_v26 = vpop.f32.mrf.mxu0 }
  0xec   :  { %v305_v27 = vpack.c.bf16 %v279_v26, %v277_v25 }
  0xf3   :  { %v282_v28 = vpop.f32.mrf.mxu0 }
  0xfb   :  { %v284_v29 = vpop.f32.mrf.mxu0 }
  0xfc   :  { %v306_v30 = vpack.c.bf16 %v284_v29, %v282_v28 }
 0x103   :  { %v287_v31 = vpop.f32.mrf.mxu0 }
 0x10b   :  { %v289_v32 = vpop.f32.mrf.mxu0 }
 0x10c   :  { %v307_v33 = vpack.c.bf16 %v289_v32, %v287_v31 }
 0x113   :  { %v292_v34 = vpop.f32.mrf.mxu0 }
 0x11b   :  { %v294_v35 = vpop.f32.mrf.mxu0 }
 0x11c   :  { %v308_v36 = vpack.c.bf16 %v294_v35, %v292_v34 }
 0x123   :  { %v297_v37 = vpop.f32.mrf.mxu0 }
 0x12b   :  { %v299_v38 = vpop.f32.mrf.mxu0 }
 0x12c   :  { %v309_v39 = vpack.c.bf16 %v299_v38, %v297_v37 }
 0x12e   :  { %382 = vmatpush.bf16.msra.mxu1 %v309_v39 }
 0x12f   :  { %2335 = dma.done.wait [#allocation5], 1024 }
 0x130   :  { %2336 = vsyncadd [#allocation5], 4294966272  ;;  %v1925_v40 = vld [vmem:[#allocation2] sm:$0xff]  ;;  %v1926_v41 = vld [vmem:[#allocation2 + $0x8] sm:$0xff]  ;;  %s1503_s27 = sshll.u32 %s2502_s10, 4  ;;  %s2348_s2 = smov 128   ;;  %s1504_s27 = int_to_ptr.hbm [resolvable:$true] %s1503_s27 }
 0x131   :  { %v1927_v42 = vld [vmem:[#allocation2 + $0x10] sm:$0xff]  ;;  %v1928_v43 = vld [vmem:[#allocation2 + $0x18] sm:$0xff]  ;;  %v1929_v44 = vld [vmem:[#allocation2 + $0x20] sm:$0xff]  ;;  %s2349_s28 = smov 8  }
 0x132   :  { %383 = vmatpush.bf16.msra.mxu1 %v308_v36  ;;  %v1930_v45 = vld [vmem:[#allocation2 + $0x28] sm:$0xff]  ;;  %v1948_v46 = vld [vmem:[#allocation11 + $0x38] sm:$0xff]  ;;  %v1947_v47 = vld [vmem:[#allocation11 + $0x30] sm:$0xff] }
 0x133   :  { %607 = vmatpush.bf16.msra.mxu2 %v1948_v46  ;;  %v1931_v48 = vld [vmem:[#allocation2 + $0x30] sm:$0xff]  ;;  %v1946_v49 = vld [vmem:[#allocation11 + $0x28] sm:$0xff]  ;;  %v1945_v50 = vld [vmem:[#allocation11 + $0x20] sm:$0xff] }
 0x134   :  { %v1944_v51 = vld [vmem:[#allocation11 + $0x18] sm:$0xff]  ;;  %v1943_v52 = vld [vmem:[#allocation11 + $0x10] sm:$0xff]  ;;  %v1942_v54 = vld [vmem:[#allocation11 + $0x8] sm:$0xff] }
 0x135   :  { %v1932_v53 = vld [vmem:[#allocation2 + $0x38] sm:$0xff]  ;;  %v1941_v55 = vld [vmem:[#allocation11] sm:$0xff] }
 0x136   :  { %384 = vmatpush.bf16.msra.mxu1 %v307_v33  ;;  %v2426_v57 = vld [vmem:[%s2495_s3] ss:$0 sm:$0xff] }
 0x137   :  { %608 = vmatpush.bf16.msra.mxu2 %v1947_v47 }
 0x13a   :  { %385 = vmatpush.bf16.msra.mxu1 %v306_v30 }
 0x13b   :  { %609 = vmatpush.bf16.msra.mxu2 %v1946_v49 }
 0x13e   :  { %386 = vmatpush.bf16.msra.mxu1 %v305_v27 }
 0x13f   :  { %610 = vmatpush.bf16.msra.mxu2 %v1945_v50 }
 0x142   :  { %387 = vmatpush.bf16.msra.mxu1 %v304_v24 }
 0x143   :  { %611 = vmatpush.bf16.msra.mxu2 %v1944_v51 }
 0x146   :  { %388 = vmatpush.bf16.msra.mxu1 %v303_v21 }
 0x147   :  { %612 = vmatpush.bf16.msra.mxu2 %v1943_v52 }
 0x14a   :  { %389 = vmatpush.bf16.msra.mxu1 %v302_v18 }
 0x14b   :  { %613 = vmatpush.bf16.msra.mxu2 %v1942_v54 }
 0x14d   :  { %390 = vmatmul.bf16.vlgmr.msra.gmra.mxu1 %v1925_v40 }
 0x14f   :  { %614 = vmatpush.bf16.msra.mxu2 %v1941_v55 }
 0x15d   :  { %395 = vmatmul.bf16.gmra.mxu1 %v1926_v41 }
 0x16d   :  { %400 = vmatmul.bf16.gmra.mxu1 %v1927_v42 }
 0x17d   :  { %405 = vmatmul.bf16.gmra.mxu1 %v1928_v43 }
 0x18d   :  { %410 = vmatmul.bf16.gmra.mxu1 %v1929_v44 }
 0x19d   :  { %415 = vmatmul.bf16.gmra.mxu1 %v1930_v45 }
 0x1ad   :  { %420 = vmatmul.bf16.gmra.mxu1 %v1931_v48 }
 0x1bd   :  { %425 = vmatmul.bf16.gmra.mxu1 %v1932_v53 }
 0x1ca   :  { %v391_v56 = vpop.f32.mrf.mxu1 }
 0x1cb   :  { %v392_v58 = vadd.f32 %v2426_v57, %v391_v56 }
 0x1cd   :  { %v431_v61 = vmax.f32 %v392_v58, 0.0 }
 0x1d2   :  { %v393_v59 = vpop.f32.mrf.mxu1 }
 0x1d3   :  { %v394_v60 = vadd.f32 %v2426_v57, %v393_v59 }
 0x1d5   :  { %v432_v62 = vmax.f32 %v394_v60, 0.0 }
 0x1d7   :  { %v2008_v63 = vpack.c.bf16 %v432_v62, %v431_v61 }
 0x1d9   :  { %2009 = vst [vmem:[#allocation3 + $0x30] sm:$0xff] %v2008_v63  }
 0x1da   :  { %v396_v0 = vpop.f32.mrf.mxu1 }
 0x1db   :  { %v397_v2 = vadd.f32 %v2426_v57, %v396_v0 }
 0x1dd   :  { %v433_v5 = vmax.f32 %v397_v2, 0.0 }
 0x1e0   :  { %v1933_v1 = vld [vmem:[#allocation3 + $0x30] sm:$0xff] }
 0x1e1   :  { %615 = vmatmul.bf16.vlgmr.msra.gmra.mxu2 %v1933_v1 }
 0x1e2   :  { %v398_v3 = vpop.f32.mrf.mxu1 }
 0x1e3   :  { %v399_v4 = vadd.f32 %v2426_v57, %v398_v3 }
 0x1e5   :  { %v434_v6 = vmax.f32 %v399_v4, 0.0 }
 0x1e7   :  { %v2013_v7 = vpack.c.bf16 %v434_v6, %v433_v5 }
 0x1e9   :  { %2125 = vst [vmem:[#allocation3] sm:$0xff] %v2013_v7  }
 0x1ea   :  { %v401_v8 = vpop.f32.mrf.mxu1 }
 0x1eb   :  { %v402_v10 = vadd.f32 %v2426_v57, %v401_v8 }
 0x1ed   :  { %v435_v13 = vmax.f32 %v402_v10, 0.0 }
 0x1f0   :  { %v1934_v9 = vld [vmem:[#allocation3] sm:$0xff] }
 0x1f1   :  { %620 = vmatmul.bf16.gmra.mxu2 %v1934_v9 }
 0x1f2   :  { %v403_v11 = vpop.f32.mrf.mxu1 }
 0x1f3   :  { %v404_v12 = vadd.f32 %v2426_v57, %v403_v11 }
 0x1f5   :  { %v436_v14 = vmax.f32 %v404_v12, 0.0 }
 0x1f7   :  { %v2018_v15 = vpack.c.bf16 %v436_v14, %v435_v13 }
 0x1f9   :  { %2126 = vst [vmem:[#allocation3 + $0x18] sm:$0xff] %v2018_v15  }
 0x1fa   :  { %v406_v16 = vpop.f32.mrf.mxu1 }
 0x1fb   :  { %v407_v18 = vadd.f32 %v2426_v57, %v406_v16 }
 0x1fd   :  { %v437_v21 = vmax.f32 %v407_v18, 0.0  ;;  %v1950_v18 = vld [vmem:[#allocation2 + $0x8] sm:$0xff] }
 0x200   :  { %v1935_v17 = vld [vmem:[#allocation3 + $0x18] sm:$0xff] }
 0x201   :  { %625 = vmatmul.bf16.gmra.mxu2 %v1935_v17  ;;  %v1949_v17 = vld [vmem:[#allocation2] sm:$0xff] }
 0x202   :  { %v408_v19 = vpop.f32.mrf.mxu1 }
 0x203   :  { %v409_v20 = vadd.f32 %v2426_v57, %v408_v19  ;;  %v1951_v19 = vld [vmem:[#allocation2 + $0x10] sm:$0xff] }
 0x205   :  { %v438_v22 = vmax.f32 %v409_v20, 0.0  ;;  %v1952_v20 = vld [vmem:[#allocation2 + $0x18] sm:$0xff] }
 0x207   :  { %v2023_v23 = vpack.c.bf16 %v438_v22, %v437_v21  ;;  %v1953_v21 = vld [vmem:[#allocation2 + $0x20] sm:$0xff]  ;;  %v1954_v22 = vld [vmem:[#allocation2 + $0x28] sm:$0xff] }
 0x209   :  { %2127 = vst [vmem:[#allocation3 + $0x10] sm:$0xff] %v2023_v23   ;;  %v1972_v23 = vld [vmem:[#allocation12 + $0x38] sm:$0xff] }
 0x20a   :  { %v411_v24 = vpop.f32.mrf.mxu1  ;;  %957 = vmatpush.bf16.msrb.mxu0 %v1972_v23 }
 0x20b   :  { %v412_v26 = vadd.f32 %v2426_v57, %v411_v24  ;;  %v1971_v24 = vld [vmem:[#allocation12 + $0x30] sm:$0xff] }
 0x20d   :  { %v439_v29 = vmax.f32 %v412_v26, 0.0  ;;  %v1970_v26 = vld [vmem:[#allocation12 + $0x28] sm:$0xff] }
 0x20e   :  { %958 = vmatpush.bf16.msrb.mxu0 %v1971_v24 }
 0x210   :  { %v1936_v25 = vld [vmem:[#allocation3 + $0x10] sm:$0xff] }
 0x211   :  { %630 = vmatmul.bf16.gmra.mxu2 %v1936_v25  ;;  %v1955_v25 = vld [vmem:[#allocation2 + $0x30] sm:$0xff] }
 0x212   :  { %v413_v27 = vpop.f32.mrf.mxu1  ;;  %959 = vmatpush.bf16.msrb.mxu0 %v1970_v26 }
 0x213   :  { %v414_v28 = vadd.f32 %v2426_v57, %v413_v27  ;;  %v1969_v27 = vld [vmem:[#allocation12 + $0x20] sm:$0xff] }
 0x215   :  { %v440_v30 = vmax.f32 %v414_v28, 0.0  ;;  %v1968_v28 = vld [vmem:[#allocation12 + $0x18] sm:$0xff] }
 0x216   :  { %960 = vmatpush.bf16.msrb.mxu0 %v1969_v27 }
 0x217   :  { %v2028_v31 = vpack.c.bf16 %v440_v30, %v439_v29  ;;  %v1956_v29 = vld [vmem:[#allocation2 + $0x38] sm:$0xff]  ;;  %v1967_v30 = vld [vmem:[#allocation12 + $0x10] sm:$0xff] }
 0x219   :  { %2128 = vst [vmem:[#allocation3 + $0x8] sm:$0xff] %v2028_v31   ;;  %v1966_v31 = vld [vmem:[#allocation12 + $0x8] sm:$0xff] }
 0x21a   :  { %v416_v32 = vpop.f32.mrf.mxu1  ;;  %961 = vmatpush.bf16.msrb.mxu0 %v1968_v28 }
 0x21b   :  { %v417_v34 = vadd.f32 %v2426_v57, %v416_v32  ;;  %v1965_v32 = vld [vmem:[#allocation12] sm:$0xff] }
 0x21d   :  { %v441_v37 = vmax.f32 %v417_v34, 0.0  ;;  %v2447_v34 = vld [vmem:[%s2497_s5] ss:$0 sm:$0xff] }
 0x21e   :  { %962 = vmatpush.bf16.msrb.mxu0 %v1967_v30 }
 0x220   :  { %v1937_v33 = vld [vmem:[#allocation3 + $0x8] sm:$0xff] }
 0x221   :  { %635 = vmatmul.bf16.gmra.mxu2 %v1937_v33 }
 0x222   :  { %v418_v35 = vpop.f32.mrf.mxu1  ;;  %963 = vmatpush.bf16.msrb.mxu0 %v1966_v31 }
 0x223   :  { %v419_v36 = vadd.f32 %v2426_v57, %v418_v35 }
 0x225   :  { %v442_v38 = vmax.f32 %v419_v36, 0.0 }
 0x226   :  { %964 = vmatpush.bf16.msrb.mxu0 %v1965_v32 }
 0x227   :  { %v2033_v39 = vpack.c.bf16 %v442_v38, %v441_v37 }
 0x229   :  { %2129 = vst [vmem:[#allocation3 + $0x20] sm:$0xff] %v2033_v39  }
 0x22a   :  { %v421_v40 = vpop.f32.mrf.mxu1 }
 0x22b   :  { %v422_v42 = vadd.f32 %v2426_v57, %v421_v40 }
 0x22d   :  { %v443_v45 = vmax.f32 %v422_v42, 0.0 }
 0x230   :  { %v1938_v41 = vld [vmem:[#allocation3 + $0x20] sm:$0xff] }
 0x231   :  { %640 = vmatmul.bf16.gmra.mxu2 %v1938_v41 }
 0x232   :  { %v423_v43 = vpop.f32.mrf.mxu1 }
 0x233   :  { %v424_v44 = vadd.f32 %v2426_v57, %v423_v43 }
 0x235   :  { %v444_v46 = vmax.f32 %v424_v44, 0.0 }
 0x237   :  { %v2038_v47 = vpack.c.bf16 %v444_v46, %v443_v45 }
 0x239   :  { %2130 = vst [vmem:[#allocation3 + $0x28] sm:$0xff] %v2038_v47  }
 0x23a   :  { %v426_v48 = vpop.f32.mrf.mxu1 }
 0x23b   :  { %v427_v50 = vadd.f32 %v2426_v57, %v426_v48 }
 0x23d   :  { %v445_v53 = vmax.f32 %v427_v50, 0.0 }
 0x240   :  { %v1939_v49 = vld [vmem:[#allocation3 + $0x28] sm:$0xff] }
 0x241   :  { %645 = vmatmul.bf16.gmra.mxu2 %v1939_v49 }
 0x242   :  { %v428_v51 = vpop.f32.mrf.mxu1 }
 0x243   :  { %v429_v52 = vadd.f32 %v2426_v57, %v428_v51 }
 0x245   :  { %v446_v54 = vmax.f32 %v429_v52, 0.0 }
 0x247   :  { %v2043_v55 = vpack.c.bf16 %v446_v54, %v445_v53 }
 0x249   :  { %2131 = vst [vmem:[#allocation3 + $0x38] sm:$0xff] %v2043_v55  }
 0x250   :  { %v1940_v56 = vld [vmem:[#allocation3 + $0x38] sm:$0xff] }
 0x251   :  { %650 = vmatmul.bf16.gmra.mxu2 %v1940_v56 }
 0x264   :  { %v616_v58 = vpop.f32.mrf.mxu2 }
 0x26c   :  { %v618_v59 = vpop.f32.mrf.mxu2 }
 0x26d   :  { %v656_v16 = vpack.c.bf16 %v618_v59, %v616_v58 }
 0x274   :  { %v621_v60 = vpop.f32.mrf.mxu2 }
 0x27c   :  { %v623_v61 = vpop.f32.mrf.mxu2 }
 0x27d   :  { %v657_v15 = vpack.c.bf16 %v623_v61, %v621_v60 }
 0x284   :  { %v626_v62 = vpop.f32.mrf.mxu2 }
 0x28c   :  { %v628_v63 = vpop.f32.mrf.mxu2 }
 0x28d   :  { %v658_v14 = vpack.c.bf16 %v628_v63, %v626_v62 }
 0x294   :  { %v631_v0 = vpop.f32.mrf.mxu2 }
 0x29c   :  { %v633_v1 = vpop.f32.mrf.mxu2 }
 0x29d   :  { %v659_v13 = vpack.c.bf16 %v633_v1, %v631_v0 }
 0x2a4   :  { %v636_v2 = vpop.f32.mrf.mxu2 }
 0x2ac   :  { %v638_v3 = vpop.f32.mrf.mxu2 }
 0x2ad   :  { %v660_v12 = vpack.c.bf16 %v638_v3, %v636_v2 }
 0x2b4   :  { %v641_v4 = vpop.f32.mrf.mxu2 }
 0x2bc   :  { %v643_v5 = vpop.f32.mrf.mxu2 }
 0x2bd   :  { %v661_v11 = vpack.c.bf16 %v643_v5, %v641_v4 }
 0x2c4   :  { %v646_v6 = vpop.f32.mrf.mxu2 }
 0x2cc   :  { %v648_v57 = vpop.f32.mrf.mxu2 }
 0x2cd   :  { %v662_v10 = vpack.c.bf16 %v648_v57, %v646_v6 }
 0x2d4   :  { %v651_v7 = vpop.f32.mrf.mxu2 }
 0x2dc   :  { %v653_v8 = vpop.f32.mrf.mxu2 }
 0x2dd   :  { %v663_v9 = vpack.c.bf16 %v653_v8, %v651_v7 }
 0x2df   :  { %732 = vmatpush.bf16.msra.mxu3 %v663_v9 }
 0x2e3   :  { %733 = vmatpush.bf16.msra.mxu3 %v662_v10 }
 0x2e7   :  { %734 = vmatpush.bf16.msra.mxu3 %v661_v11 }
 0x2eb   :  { %735 = vmatpush.bf16.msra.mxu3 %v660_v12 }
 0x2ef   :  { %736 = vmatpush.bf16.msra.mxu3 %v659_v13 }
 0x2f3   :  { %737 = vmatpush.bf16.msra.mxu3 %v658_v14 }
 0x2f7   :  { %738 = vmatpush.bf16.msra.mxu3 %v657_v15 }
 0x2fb   :  { %739 = vmatpush.bf16.msra.mxu3 %v656_v16 }
 0x2fe   :  { %740 = vmatmul.bf16.vlgmr.msra.gmra.mxu3 %v1949_v17 }
 0x30e   :  { %745 = vmatmul.bf16.gmra.mxu3 %v1950_v18 }
 0x31e   :  { %750 = vmatmul.bf16.gmra.mxu3 %v1951_v19 }
 0x32e   :  { %755 = vmatmul.bf16.gmra.mxu3 %v1952_v20 }
 0x33e   :  { %760 = vmatmul.bf16.gmra.mxu3 %v1953_v21 }
 0x34e   :  { %765 = vmatmul.bf16.gmra.mxu3 %v1954_v22 }
 0x35e   :  { %770 = vmatmul.bf16.gmra.mxu3 %v1955_v25 }
 0x36e   :  { %775 = vmatmul.bf16.gmra.mxu3 %v1956_v29 }
 0x381   :  { %v741_v33 = vpop.f32.mrf.mxu3 }
 0x382   :  { %v742_v35 = vadd.f32 %v2447_v34, %v741_v33 }
 0x384   :  { %v781_v38 = vmax.f32 %v742_v35, 0.0 }
 0x389   :  { %v743_v36 = vpop.f32.mrf.mxu3 }
 0x38a   :  { %v744_v37 = vadd.f32 %v2447_v34, %v743_v36 }
 0x38c   :  { %v782_v39 = vmax.f32 %v744_v37, 0.0 }
 0x38e   :  { %v2048_v40 = vpack.c.bf16 %v782_v39, %v781_v38 }
 0x390   :  { %2049 = vst [vmem:[#allocation4] sm:$0xff] %v2048_v40  }
 0x391   :  { %v746_v41 = vpop.f32.mrf.mxu3 }
 0x392   :  { %v747_v43 = vadd.f32 %v2447_v34, %v746_v41 }
 0x394   :  { %v783_v46 = vmax.f32 %v747_v43, 0.0 }
 0x397   :  { %v1957_v42 = vld [vmem:[#allocation4] sm:$0xff] }
 0x398   :  { %965 = vmatmul.bf16.vlgmr.msrb.gmra.mxu0 %v1957_v42 }
 0x399   :  { %v748_v44 = vpop.f32.mrf.mxu3 }
 0x39a   :  { %v749_v45 = vadd.f32 %v2447_v34, %v748_v44 }
 0x39c   :  { %v784_v47 = vmax.f32 %v749_v45, 0.0 }
 0x39e   :  { %v2053_v48 = vpack.c.bf16 %v784_v47, %v783_v46 }
 0x3a0   :  { %2132 = vst [vmem:[#allocation4 + $0x18] sm:$0xff] %v2053_v48  }
 0x3a1   :  { %v751_v49 = vpop.f32.mrf.mxu3 }
 0x3a2   :  { %v752_v51 = vadd.f32 %v2447_v34, %v751_v49 }
 0x3a4   :  { %v785_v54 = vmax.f32 %v752_v51, 0.0 }
 0x3a7   :  { %v1958_v50 = vld [vmem:[#allocation4 + $0x18] sm:$0xff] }
 0x3a8   :  { %970 = vmatmul.bf16.gmra.mxu0 %v1958_v50 }
 0x3a9   :  { %v753_v52 = vpop.f32.mrf.mxu3 }
 0x3aa   :  { %v754_v53 = vadd.f32 %v2447_v34, %v753_v52 }
 0x3ac   :  { %v786_v55 = vmax.f32 %v754_v53, 0.0 }
 0x3ae   :  { %v2058_v56 = vpack.c.bf16 %v786_v55, %v785_v54 }
 0x3b0   :  { %2133 = vst [vmem:[#allocation4 + $0x10] sm:$0xff] %v2058_v56  }
 0x3b1   :  { %v756_v58 = vpop.f32.mrf.mxu3 }
 0x3b2   :  { %v757_v60 = vadd.f32 %v2447_v34, %v756_v58 }
 0x3b4   :  { %v787_v63 = vmax.f32 %v757_v60, 0.0  ;;  %v1974_v60 = vld [vmem:[#allocation2 + $0x8] sm:$0xff] }
 0x3b7   :  { %v1959_v59 = vld [vmem:[#allocation4 + $0x10] sm:$0xff] }
 0x3b8   :  { %975 = vmatmul.bf16.gmra.mxu0 %v1959_v59  ;;  %v1973_v59 = vld [vmem:[#allocation2] sm:$0xff] }
 0x3b9   :  { %v758_v61 = vpop.f32.mrf.mxu3 }
 0x3ba   :  { %v759_v62 = vadd.f32 %v2447_v34, %v758_v61  ;;  %v1975_v61 = vld [vmem:[#allocation2 + $0x10] sm:$0xff] }
 0x3bc   :  { %v788_v0 = vmax.f32 %v759_v62, 0.0  ;;  %v1976_v62 = vld [vmem:[#allocation2 + $0x18] sm:$0xff] }
 0x3be   :  { %v2063_v1 = vpack.c.bf16 %v788_v0, %v787_v63  ;;  %v1977_v63 = vld [vmem:[#allocation2 + $0x20] sm:$0xff]  ;;  %v1978_v0 = vld [vmem:[#allocation2 + $0x28] sm:$0xff] }
 0x3c0   :  { %2134 = vst [vmem:[#allocation4 + $0x20] sm:$0xff] %v2063_v1   ;;  %v1996_v1 = vld [vmem:[#allocation14 + $0x38] sm:$0xff] }
 0x3c1   :  { %v761_v2 = vpop.f32.mrf.mxu3  ;;  %1307 = vmatpush.bf16.msrb.mxu2 %v1996_v1 }
 0x3c2   :  { %v762_v4 = vadd.f32 %v2447_v34, %v761_v2  ;;  %v1995_v2 = vld [vmem:[#allocation14 + $0x30] sm:$0xff] }
 0x3c4   :  { %v789_v57 = vmax.f32 %v762_v4, 0.0  ;;  %v1994_v4 = vld [vmem:[#allocation14 + $0x28] sm:$0xff] }
 0x3c5   :  { %1308 = vmatpush.bf16.msrb.mxu2 %v1995_v2 }
 0x3c7   :  { %v1960_v3 = vld [vmem:[#allocation4 + $0x20] sm:$0xff] }
 0x3c8   :  { %980 = vmatmul.bf16.gmra.mxu0 %v1960_v3  ;;  %v1979_v3 = vld [vmem:[#allocation2 + $0x30] sm:$0xff] }
 0x3c9   :  { %v763_v5 = vpop.f32.mrf.mxu3  ;;  %1309 = vmatpush.bf16.msrb.mxu2 %v1994_v4 }
 0x3ca   :  { %v764_v6 = vadd.f32 %v2447_v34, %v763_v5  ;;  %v1993_v5 = vld [vmem:[#allocation14 + $0x20] sm:$0xff] }
 0x3cc   :  { %v790_v7 = vmax.f32 %v764_v6, 0.0  ;;  %v1992_v6 = vld [vmem:[#allocation14 + $0x18] sm:$0xff] }
 0x3cd   :  { %1310 = vmatpush.bf16.msrb.mxu2 %v1993_v5 }
 0x3ce   :  { %v2068_v8 = vpack.c.bf16 %v790_v7, %v789_v57  ;;  %v1991_v57 = vld [vmem:[#allocation14 + $0x10] sm:$0xff]  ;;  %v1980_v7 = vld [vmem:[#allocation2 + $0x38] sm:$0xff] }
 0x3d0   :  { %2135 = vst [vmem:[#allocation4 + $0x28] sm:$0xff] %v2068_v8   ;;  %v1990_v8 = vld [vmem:[#allocation14 + $0x8] sm:$0xff] }
 0x3d1   :  { %v766_v9 = vpop.f32.mrf.mxu3  ;;  %1311 = vmatpush.bf16.msrb.mxu2 %v1992_v6 }
 0x3d2   :  { %v767_v11 = vadd.f32 %v2447_v34, %v766_v9  ;;  %v1989_v9 = vld [vmem:[#allocation14] sm:$0xff] }
 0x3d4   :  { %v791_v14 = vmax.f32 %v767_v11, 0.0  ;;  %v2468_v11 = vld [vmem:[%s2499_s7] ss:$0 sm:$0xff] }
 0x3d5   :  { %1312 = vmatpush.bf16.msrb.mxu2 %v1991_v57 }
 0x3d7   :  { %v1961_v10 = vld [vmem:[#allocation4 + $0x28] sm:$0xff] }
 0x3d8   :  { %985 = vmatmul.bf16.gmra.mxu0 %v1961_v10 }
 0x3d9   :  { %v768_v12 = vpop.f32.mrf.mxu3  ;;  %1313 = vmatpush.bf16.msrb.mxu2 %v1990_v8 }
 0x3da   :  { %v769_v13 = vadd.f32 %v2447_v34, %v768_v12 }
 0x3dc   :  { %v792_v15 = vmax.f32 %v769_v13, 0.0 }
 0x3dd   :  { %1314 = vmatpush.bf16.msrb.mxu2 %v1989_v9 }
 0x3de   :  { %v2073_v16 = vpack.c.bf16 %v792_v15, %v791_v14 }
 0x3e0   :  { %2136 = vst [vmem:[#allocation4 + $0x8] sm:$0xff] %v2073_v16  }
 0x3e1   :  { %v771_v17 = vpop.f32.mrf.mxu3 }
 0x3e2   :  { %v772_v19 = vadd.f32 %v2447_v34, %v771_v17 }
 0x3e4   :  { %v793_v22 = vmax.f32 %v772_v19, 0.0 }
 0x3e7   :  { %v1962_v18 = vld [vmem:[#allocation4 + $0x8] sm:$0xff] }
 0x3e8   :  { %990 = vmatmul.bf16.gmra.mxu0 %v1962_v18 }
 0x3e9   :  { %v773_v20 = vpop.f32.mrf.mxu3 }
 0x3ea   :  { %v774_v21 = vadd.f32 %v2447_v34, %v773_v20 }
 0x3ec   :  { %v794_v23 = vmax.f32 %v774_v21, 0.0 }
 0x3ee   :  { %v2078_v24 = vpack.c.bf16 %v794_v23, %v793_v22 }
 0x3f0   :  { %2137 = vst [vmem:[#allocation4 + $0x30] sm:$0xff] %v2078_v24  }
 0x3f1   :  { %v776_v25 = vpop.f32.mrf.mxu3 }
 0x3f2   :  { %v777_v27 = vadd.f32 %v2447_v34, %v776_v25 }
 0x3f4   :  { %v795_v30 = vmax.f32 %v777_v27, 0.0 }
 0x3f7   :  { %v1963_v26 = vld [vmem:[#allocation4 + $0x30] sm:$0xff] }
 0x3f8   :  { %995 = vmatmul.bf16.gmra.mxu0 %v1963_v26 }
 0x3f9   :  { %v778_v28 = vpop.f32.mrf.mxu3 }
 0x3fa   :  { %v779_v29 = vadd.f32 %v2447_v34, %v778_v28 }
 0x3fc   :  { %v796_v31 = vmax.f32 %v779_v29, 0.0 }
 0x3fe   :  { %v2083_v32 = vpack.c.bf16 %v796_v31, %v795_v30 }
 0x400   :  { %2138 = vst [vmem:[#allocation4 + $0x38] sm:$0xff] %v2083_v32  }
 0x407   :  { %v1964_v33 = vld [vmem:[#allocation4 + $0x38] sm:$0xff] }
 0x408   :  { %1000 = vmatmul.bf16.gmra.mxu0 %v1964_v33 }
 0x415   :  { %v966_v35 = vpop.f32.mrf.mxu0 }
 0x41d   :  { %v968_v36 = vpop.f32.mrf.mxu0 }
 0x41e   :  { %v1006_v37 = vpack.c.bf16 %v968_v36, %v966_v35 }
 0x425   :  { %v971_v38 = vpop.f32.mrf.mxu0 }
 0x42d   :  { %v973_v39 = vpop.f32.mrf.mxu0 }
 0x42e   :  { %v1007_v40 = vpack.c.bf16 %v973_v39, %v971_v38 }
 0x435   :  { %v976_v41 = vpop.f32.mrf.mxu0 }
 0x43d   :  { %v978_v42 = vpop.f32.mrf.mxu0 }
 0x43e   :  { %v1008_v43 = vpack.c.bf16 %v978_v42, %v976_v41 }
 0x445   :  { %v981_v44 = vpop.f32.mrf.mxu0 }
 0x44d   :  { %v983_v45 = vpop.f32.mrf.mxu0 }
 0x44e   :  { %v1009_v46 = vpack.c.bf16 %v983_v45, %v981_v44 }
 0x455   :  { %v986_v47 = vpop.f32.mrf.mxu0 }
 0x45d   :  { %v988_v34 = vpop.f32.mrf.mxu0 }
 0x45e   :  { %v1010_v58 = vpack.c.bf16 %v988_v34, %v986_v47 }
 0x465   :  { %v991_v48 = vpop.f32.mrf.mxu0 }
 0x46d   :  { %v993_v49 = vpop.f32.mrf.mxu0 }
 0x46e   :  { %v1011_v56 = vpack.c.bf16 %v993_v49, %v991_v48 }
 0x475   :  { %v996_v50 = vpop.f32.mrf.mxu0 }
 0x47d   :  { %v998_v51 = vpop.f32.mrf.mxu0 }
 0x47e   :  { %v1012_v55 = vpack.c.bf16 %v998_v51, %v996_v50 }
 0x485   :  { %v1001_v52 = vpop.f32.mrf.mxu0 }
 0x48d   :  { %v1003_v53 = vpop.f32.mrf.mxu0 }
 0x48e   :  { %v1013_v54 = vpack.c.bf16 %v1003_v53, %v1001_v52 }
 0x490   :  { %1082 = vmatpush.bf16.msrb.mxu1 %v1013_v54 }
 0x494   :  { %1083 = vmatpush.bf16.msrb.mxu1 %v1012_v55 }
 0x498   :  { %1084 = vmatpush.bf16.msrb.mxu1 %v1011_v56 }
 0x49c   :  { %1085 = vmatpush.bf16.msrb.mxu1 %v1010_v58 }
 0x4a0   :  { %1086 = vmatpush.bf16.msrb.mxu1 %v1009_v46 }
 0x4a4   :  { %1087 = vmatpush.bf16.msrb.mxu1 %v1008_v43 }
 0x4a8   :  { %1088 = vmatpush.bf16.msrb.mxu1 %v1007_v40 }
 0x4ac   :  { %1089 = vmatpush.bf16.msrb.mxu1 %v1006_v37 }
 0x4af   :  { %1090 = vmatmul.bf16.vlgmr.msrb.gmra.mxu1 %v1973_v59 }
 0x4bf   :  { %1095 = vmatmul.bf16.gmra.mxu1 %v1974_v60 }
 0x4cf   :  { %1100 = vmatmul.bf16.gmra.mxu1 %v1975_v61 }
 0x4df   :  { %1105 = vmatmul.bf16.gmra.mxu1 %v1976_v62 }
 0x4ef   :  { %1110 = vmatmul.bf16.gmra.mxu1 %v1977_v63 }
 0x4ff   :  { %1115 = vmatmul.bf16.gmra.mxu1 %v1978_v0 }
 0x50f   :  { %1120 = vmatmul.bf16.gmra.mxu1 %v1979_v3 }
 0x51f   :  { %1125 = vmatmul.bf16.gmra.mxu1 %v1980_v7 }
 0x52c   :  { %v1091_v10 = vpop.f32.mrf.mxu1 }
 0x52d   :  { %v1092_v12 = vadd.f32 %v2468_v11, %v1091_v10 }
 0x52f   :  { %v1131_v15 = vmax.f32 %v1092_v12, 0.0 }
 0x534   :  { %v1093_v13 = vpop.f32.mrf.mxu1 }
 0x535   :  { %v1094_v14 = vadd.f32 %v2468_v11, %v1093_v13 }
 0x537   :  { %v1132_v16 = vmax.f32 %v1094_v14, 0.0 }
 0x539   :  { %v2088_v17 = vpack.c.bf16 %v1132_v16, %v1131_v15 }
 0x53b   :  { %2089 = vst [vmem:[#allocation3 + $0x30] sm:$0xff] %v2088_v17  }
 0x53c   :  { %v1096_v18 = vpop.f32.mrf.mxu1 }
 0x53d   :  { %v1097_v20 = vadd.f32 %v2468_v11, %v1096_v18 }
 0x53f   :  { %v1133_v23 = vmax.f32 %v1097_v20, 0.0 }
 0x542   :  { %v1981_v19 = vld [vmem:[#allocation3 + $0x30] sm:$0xff] }
 0x543   :  { %1315 = vmatmul.bf16.vlgmr.msrb.gmra.mxu2 %v1981_v19 }
 0x544   :  { %v1098_v21 = vpop.f32.mrf.mxu1 }
 0x545   :  { %v1099_v22 = vadd.f32 %v2468_v11, %v1098_v21 }
 0x547   :  { %v1134_v24 = vmax.f32 %v1099_v22, 0.0 }
 0x549   :  { %v2093_v25 = vpack.c.bf16 %v1134_v24, %v1133_v23 }
 0x54b   :  { %2139 = vst [vmem:[#allocation3] sm:$0xff] %v2093_v25  }
 0x54c   :  { %v1101_v26 = vpop.f32.mrf.mxu1 }
 0x54d   :  { %v1102_v28 = vadd.f32 %v2468_v11, %v1101_v26 }
 0x54f   :  { %v1135_v31 = vmax.f32 %v1102_v28, 0.0 }
 0x552   :  { %v1982_v27 = vld [vmem:[#allocation3] sm:$0xff] }
 0x553   :  { %1320 = vmatmul.bf16.gmra.mxu2 %v1982_v27 }
 0x554   :  { %v1103_v29 = vpop.f32.mrf.mxu1 }
 0x555   :  { %v1104_v30 = vadd.f32 %v2468_v11, %v1103_v29 }
 0x557   :  { %v1136_v32 = vmax.f32 %v1104_v30, 0.0 }
 0x559   :  { %v2098_v33 = vpack.c.bf16 %v1136_v32, %v1135_v31 }
 0x55b   :  { %2140 = vst [vmem:[#allocation3 + $0x18] sm:$0xff] %v2098_v33  }
 0x55c   :  { %v1106_v35 = vpop.f32.mrf.mxu1 }
 0x55d   :  { %v1107_v37 = vadd.f32 %v2468_v11, %v1106_v35 }
 0x55f   :  { %v1137_v40 = vmax.f32 %v1107_v37, 0.0  ;;  %v1998_v37 = vld [vmem:[#allocation2 + $0x8] sm:$0xff] }
 0x562   :  { %v1983_v36 = vld [vmem:[#allocation3 + $0x18] sm:$0xff] }
 0x563   :  { %1325 = vmatmul.bf16.gmra.mxu2 %v1983_v36  ;;  %v1997_v36 = vld [vmem:[#allocation2] sm:$0xff] }
 0x564   :  { %v1108_v38 = vpop.f32.mrf.mxu1 }
 0x565   :  { %v1109_v39 = vadd.f32 %v2468_v11, %v1108_v38  ;;  %v1999_v38 = vld [vmem:[#allocation2 + $0x10] sm:$0xff] }
 0x567   :  { %v1138_v41 = vmax.f32 %v1109_v39, 0.0  ;;  %v2000_v39 = vld [vmem:[#allocation2 + $0x18] sm:$0xff] }
 0x569   :  { %v2103_v42 = vpack.c.bf16 %v1138_v41, %v1137_v40  ;;  %v2001_v40 = vld [vmem:[#allocation2 + $0x20] sm:$0xff]  ;;  %v2002_v41 = vld [vmem:[#allocation2 + $0x28] sm:$0xff] }
 0x56b   :  { %2141 = vst [vmem:[#allocation3 + $0x10] sm:$0xff] %v2103_v42   ;;  %v2003_v42 = vld [vmem:[#allocation2 + $0x30] sm:$0xff] }
 0x56c   :  { %v1111_v43 = vpop.f32.mrf.mxu1 }
 0x56d   :  { %v1112_v45 = vadd.f32 %v2468_v11, %v1111_v43  ;;  %v2004_v43 = vld [vmem:[#allocation2 + $0x38] sm:$0xff] }
 0x56f   :  { %v1139_v34 = vmax.f32 %v1112_v45, 0.0 }
 0x572   :  { %v1984_v44 = vld [vmem:[#allocation3 + $0x10] sm:$0xff] }
 0x573   :  { %1330 = vmatmul.bf16.gmra.mxu2 %v1984_v44  ;;  %v2160_v44 = vld [vmem:[%s2501_s9] ss:$0 sm:$0xff]  ;;  %s2347_s9 = smov [#allocation15]  }
 0x574   :  { %v1113_v46 = vpop.f32.mrf.mxu1  ;;  %s1501_s24 = sshll.u32 %s2347_s9, 4  ;;  %s1502_s24 = int_to_ptr.vmem [resolvable:$true] %s1501_s24 }
 0x575   :  { %v1114_v47 = vadd.f32 %v2468_v11, %v1113_v46 }
 0x577   :  { %v1140_v48 = vmax.f32 %v1114_v47, 0.0 }
 0x579   :  { %v2108_v49 = vpack.c.bf16 %v1140_v48, %v1139_v34 }
 0x57b   :  { %2142 = vst [vmem:[#allocation3 + $0x8] sm:$0xff] %v2108_v49  }
 0x57c   :  { %v1116_v50 = vpop.f32.mrf.mxu1 }
 0x57d   :  { %v1117_v52 = vadd.f32 %v2468_v11, %v1116_v50 }
 0x57f   :  { %v1141_v55 = vmax.f32 %v1117_v52, 0.0 }
 0x582   :  { %v1985_v51 = vld [vmem:[#allocation3 + $0x8] sm:$0xff] }
 0x583   :  { %1335 = vmatmul.bf16.gmra.mxu2 %v1985_v51 }
 0x584   :  { %v1118_v53 = vpop.f32.mrf.mxu1 }
 0x585   :  { %v1119_v54 = vadd.f32 %v2468_v11, %v1118_v53 }
 0x587   :  { %v1142_v56 = vmax.f32 %v1119_v54, 0.0 }
 0x589   :  { %v2113_v58 = vpack.c.bf16 %v1142_v56, %v1141_v55 }
 0x58b   :  { %2143 = vst [vmem:[#allocation3 + $0x20] sm:$0xff] %v2113_v58  }
 0x58c   :  { %v1121_v59 = vpop.f32.mrf.mxu1 }
 0x58d   :  { %v1122_v61 = vadd.f32 %v2468_v11, %v1121_v59 }
 0x58f   :  { %v1143_v0 = vmax.f32 %v1122_v61, 0.0 }
 0x592   :  { %v1986_v60 = vld [vmem:[#allocation3 + $0x20] sm:$0xff] }
 0x593   :  { %1340 = vmatmul.bf16.gmra.mxu2 %v1986_v60 }
 0x594   :  { %v1123_v62 = vpop.f32.mrf.mxu1 }
 0x595   :  { %v1124_v63 = vadd.f32 %v2468_v11, %v1123_v62 }
 0x597   :  { %v1144_v1 = vmax.f32 %v1124_v63, 0.0 }
 0x599   :  { %v2118_v2 = vpack.c.bf16 %v1144_v1, %v1143_v0 }
 0x59b   :  { %2144 = vst [vmem:[#allocation3 + $0x28] sm:$0xff] %v2118_v2  }
 0x59c   :  { %v1126_v3 = vpop.f32.mrf.mxu1 }
 0x59d   :  { %v1127_v5 = vadd.f32 %v2468_v11, %v1126_v3 }
 0x59f   :  { %v1145_v7 = vmax.f32 %v1127_v5, 0.0 }
 0x5a2   :  { %v1987_v4 = vld [vmem:[#allocation3 + $0x28] sm:$0xff] }
 0x5a3   :  { %1345 = vmatmul.bf16.gmra.mxu2 %v1987_v4 }
 0x5a4   :  { %v1128_v6 = vpop.f32.mrf.mxu1 }
 0x5a5   :  { %v1129_v57 = vadd.f32 %v2468_v11, %v1128_v6 }
 0x5a7   :  { %v1146_v8 = vmax.f32 %v1129_v57, 0.0 }
 0x5a9   :  { %v2123_v9 = vpack.c.bf16 %v1146_v8, %v1145_v7 }
 0x5ab   :  { %2145 = vst [vmem:[#allocation3 + $0x38] sm:$0xff] %v2123_v9  }
 0x5b2   :  { %v1988_v10 = vld [vmem:[#allocation3 + $0x38] sm:$0xff] }
 0x5b3   :  { %1350 = vmatmul.bf16.gmra.mxu2 %v1988_v10 }
 0x5c6   :  { %v1316_v12 = vpop.f32.mrf.mxu2 }
 0x5ce   :  { %v1318_v13 = vpop.f32.mrf.mxu2 }
 0x5cf   :  { %v1356_v14 = vpack.c.bf16 %v1318_v13, %v1316_v12 }
 0x5d6   :  { %v1321_v15 = vpop.f32.mrf.mxu2 }
 0x5de   :  { %v1323_v16 = vpop.f32.mrf.mxu2 }
 0x5df   :  { %v1357_v17 = vpack.c.bf16 %v1323_v16, %v1321_v15 }
 0x5e6   :  { %v1326_v18 = vpop.f32.mrf.mxu2 }
 0x5ee   :  { %v1328_v19 = vpop.f32.mrf.mxu2 }
 0x5ef   :  { %v1358_v20 = vpack.c.bf16 %v1328_v19, %v1326_v18 }
 0x5f6   :  { %v1331_v21 = vpop.f32.mrf.mxu2 }
 0x5fe   :  { %v1333_v22 = vpop.f32.mrf.mxu2 }
 0x5ff   :  { %v1359_v23 = vpack.c.bf16 %v1333_v22, %v1331_v21 }
 0x606   :  { %v1336_v24 = vpop.f32.mrf.mxu2 }
 0x60e   :  { %v1338_v11 = vpop.f32.mrf.mxu2 }
 0x60f   :  { %v1360_v35 = vpack.c.bf16 %v1338_v11, %v1336_v24 }
 0x616   :  { %v1341_v25 = vpop.f32.mrf.mxu2 }
 0x61e   :  { %v1343_v26 = vpop.f32.mrf.mxu2 }
 0x61f   :  { %v1361_v33 = vpack.c.bf16 %v1343_v26, %v1341_v25 }
 0x626   :  { %v1346_v27 = vpop.f32.mrf.mxu2 }
 0x62e   :  { %v1348_v28 = vpop.f32.mrf.mxu2 }
 0x62f   :  { %v1362_v32 = vpack.c.bf16 %v1348_v28, %v1346_v27 }
 0x636   :  { %v1351_v29 = vpop.f32.mrf.mxu2 }
 0x63e   :  { %v1353_v30 = vpop.f32.mrf.mxu2 }
 0x63f   :  { %v1363_v31 = vpack.c.bf16 %v1353_v30, %v1351_v29 }
 0x641   :  { %1432 = vmatpush.bf16.msrb.mxu3 %v1363_v31 }
 0x645   :  { %1433 = vmatpush.bf16.msrb.mxu3 %v1362_v32 }
 0x649   :  { %1434 = vmatpush.bf16.msrb.mxu3 %v1361_v33 }
 0x64d   :  { %1435 = vmatpush.bf16.msrb.mxu3 %v1360_v35 }
 0x651   :  { %1436 = vmatpush.bf16.msrb.mxu3 %v1359_v23 }
 0x655   :  { %1437 = vmatpush.bf16.msrb.mxu3 %v1358_v20 }
 0x659   :  { %1438 = vmatpush.bf16.msrb.mxu3 %v1357_v17 }
 0x65d   :  { %1439 = vmatpush.bf16.msrb.mxu3 %v1356_v14 }
 0x660   :  { %1440 = vmatmul.bf16.vlgmr.msrb.gmra.mxu3 %v1997_v36 }
 0x670   :  { %1445 = vmatmul.bf16.gmra.mxu3 %v1998_v37 }
 0x680   :  { %1450 = vmatmul.bf16.gmra.mxu3 %v1999_v38 }
 0x690   :  { %1455 = vmatmul.bf16.gmra.mxu3 %v2000_v39 }
 0x6a0   :  { %1460 = vmatmul.bf16.gmra.mxu3 %v2001_v40 }
 0x6b0   :  { %1465 = vmatmul.bf16.gmra.mxu3 %v2002_v41 }
 0x6c0   :  { %1470 = vmatmul.bf16.gmra.mxu3 %v2003_v42 }
 0x6d0   :  { %1475 = vmatmul.bf16.gmra.mxu3 %v2004_v43 }
 0x6e3   :  { %v1441_v45 = vpop.f32.mrf.mxu3 }
 0x6e4   :  { %v1442_v46 = vadd.f32 %v2160_v44, %v1441_v45 }
 0x6e6   :  { %1481 = vst [vmem:[#allocation15] sm:$0xff] %v1442_v46 }
 0x6eb   :  { %v1443_v47 = vpop.f32.mrf.mxu3 }
 0x6ec   :  { %v1444_v34 = vadd.f32 %v2160_v44, %v1443_v47 }
 0x6ee   :  { %1482 = vst [vmem:[#allocation15 + $0x8] sm:$0xff] %v1444_v34 }
 0x6f3   :  { %v1446_v48 = vpop.f32.mrf.mxu3 }
 0x6f4   :  { %v1447_v49 = vadd.f32 %v2160_v44, %v1446_v48 }
 0x6f6   :  { %1483 = vst [vmem:[#allocation15 + $0x10] sm:$0xff] %v1447_v49 }
 0x6fb   :  { %v1448_v50 = vpop.f32.mrf.mxu3 }
 0x6fc   :  { %v1449_v51 = vadd.f32 %v2160_v44, %v1448_v50 }
 0x6fe   :  { %1484 = vst [vmem:[#allocation15 + $0x18] sm:$0xff] %v1449_v51 }
 0x703   :  { %v1451_v52 = vpop.f32.mrf.mxu3 }
 0x704   :  { %v1452_v53 = vadd.f32 %v2160_v44, %v1451_v52 }
 0x706   :  { %1485 = vst [vmem:[#allocation15 + $0x20] sm:$0xff] %v1452_v53 }
 0x70b   :  { %v1453_v54 = vpop.f32.mrf.mxu3 }
 0x70c   :  { %v1454_v55 = vadd.f32 %v2160_v44, %v1453_v54 }
 0x70e   :  { %1486 = vst [vmem:[#allocation15 + $0x28] sm:$0xff] %v1454_v55 }
 0x713   :  { %v1456_v56 = vpop.f32.mrf.mxu3 }
 0x714   :  { %v1457_v58 = vadd.f32 %v2160_v44, %v1456_v56 }
 0x716   :  { %1487 = vst [vmem:[#allocation15 + $0x30] sm:$0xff] %v1457_v58 }
 0x71b   :  { %v1458_v59 = vpop.f32.mrf.mxu3 }
 0x71c   :  { %v1459_v60 = vadd.f32 %v2160_v44, %v1458_v59 }
 0x71e   :  { %1488 = vst [vmem:[#allocation15 + $0x38] sm:$0xff] %v1459_v60 }
 0x723   :  { %v1461_v61 = vpop.f32.mrf.mxu3 }
 0x724   :  { %v1462_v62 = vadd.f32 %v2160_v44, %v1461_v61 }
 0x726   :  { %1489 = vst [vmem:[#allocation15 + $0x40] sm:$0xff] %v1462_v62 }
 0x72b   :  { %v1463_v63 = vpop.f32.mrf.mxu3 }
 0x72c   :  { %v1464_v0 = vadd.f32 %v2160_v44, %v1463_v63 }
 0x72e   :  { %1490 = vst [vmem:[#allocation15 + $0x48] sm:$0xff] %v1464_v0 }
 0x733   :  { %v1466_v1 = vpop.f32.mrf.mxu3 }
 0x734   :  { %v1467_v2 = vadd.f32 %v2160_v44, %v1466_v1 }
 0x736   :  { %1491 = vst [vmem:[#allocation15 + $0x50] sm:$0xff] %v1467_v2 }
 0x73b   :  { %v1468_v3 = vpop.f32.mrf.mxu3 }
 0x73c   :  { %v1469_v4 = vadd.f32 %v2160_v44, %v1468_v3 }
 0x73e   :  { %1492 = vst [vmem:[#allocation15 + $0x58] sm:$0xff] %v1469_v4 }
 0x743   :  { %v1471_v5 = vpop.f32.mrf.mxu3 }
 0x744   :  { %v1472_v6 = vadd.f32 %v2160_v44, %v1471_v5 }
 0x746   :  { %1493 = vst [vmem:[#allocation15 + $0x60] sm:$0xff] %v1472_v6 }
 0x74b   :  { %v1473_v57 = vpop.f32.mrf.mxu3 }
 0x74c   :  { %v1474_v7 = vadd.f32 %v2160_v44, %v1473_v57 }
 0x74e   :  { %1494 = vst [vmem:[#allocation15 + $0x68] sm:$0xff] %v1474_v7 }
 0x753   :  { %v1476_v8 = vpop.f32.mrf.mxu3 }
 0x754   :  { %v1477_v9 = vadd.f32 %v2160_v44, %v1476_v8 }
 0x756   :  { %1495 = vst [vmem:[#allocation15 + $0x70] sm:$0xff] %v1477_v9 }
 0x75b   :  { %v1478_v10 = vpop.f32.mrf.mxu3 }
 0x75c   :  { %v1479_v12 = vadd.f32 %v2160_v44, %v1478_v10 }
 0x75e   :  { %1496 = vst [vmem:[#allocation15 + $0x78] sm:$0xff] %v1479_v12 }
 0x75f   :  { %1509 = dma.vmem_to_hbm [thread:$0]  %s1502_s24, 2048, %s1504_s27, [#allocation8], %s2348_s2, %s2348_s2, %s2349_s28  }
 0x760   :  { %2337 = dma.done.wait [#allocation8], 2048  }
 0x761   :  { %2338 = vsyncadd [#allocation8], 4294965248 }
 0x762   :  { %1514 = vsyncpa [#allocation7], 1 }
 0x763   :  { %1515 = vsyncpa [#allocation10], 1 }
 0x764   :  { %1516 = vsyncpa [#allocation13], 1 }
 0x765   :  { %1517 = vsyncpa [#allocation8], 1 }
 0x766   :  { %1518 = vsyncmov [#allocation5] }
 0x769   :  { %s1519_s29 = vpop.sfrf %1518 }
 0x76a   :  { %p1908_p0 = scmp.ne.s32.totalorder %s1519_s29, 0 }
 0x76c   :  { %1523 = shalt.err (%p1908_p0)  }

</bundles_post_ra>
